<compile_context>
chip_gen: v7x
topology: tpu7x:2x2x1
jax: 0.10.0
libtpu: 0.0.40
codegen_flags: <defaults>
</compile_context>

<pallas_src>
import jax
import jax.numpy as jnp
from jax.experimental import pallas as pl
from jax.experimental.pallas import tpu as pltpu

_LANE = 128
_DEFAULT_BLOCK_BYTES = 2 * 1024 * 1024     # per-buffer block target (~2 MiB)
_AUTO_PALLAS_MIN_ELEMENTS = 32 * 1024      # below this, plain XLA fusion wins


def _make_scale_kernel(factor, out_dtype):
    compute_f32 = jnp.issubdtype(out_dtype, jnp.floating)

    def kernel(x_ref, o_ref):
        x = x_ref[...]
        if compute_f32:
            o_ref[...] = (x.astype(jnp.float32) * jnp.float32(factor)).astype(o_ref.dtype)
        else:
            o_ref[...] = x.astype(o_ref.dtype) * jnp.asarray(factor, o_ref.dtype)

    return kernel


def _result_dtype(x_dtype, factor):
    # Match PyTorch scalar*tensor promotion: a Python float promotes integer
    # tensors to float32 but leaves float tensors alone; a Python int keeps ints.
    return jnp.result_type(x_dtype, factor)


def scale(x, factor, *, block_bytes=_DEFAULT_BLOCK_BYTES, use_pallas=None, donate=False):
    """Elementwise `factor * x`, matching Scale.forward."""
    if factor == 1:                        # same fast path as the PyTorch module
        return x

    x = jnp.asarray(x)
    out_dtype = _result_dtype(x.dtype, factor)
    total = int(x.size)

    if use_pallas is None:
        use_pallas = total >= _AUTO_PALLAS_MIN_ELEMENTS
    if not use_pallas or total == 0 or x.ndim == 0:
        # Tiny / degenerate inputs: kernel-launch + per-step overhead dwarfs the
        # few KiB of traffic; let XLA fuse the scalar multiply instead.
        if jnp.issubdtype(out_dtype, jnp.floating):
            return (x.astype(jnp.float32) * jnp.float32(factor)).astype(out_dtype)
        return x.astype(out_dtype) * jnp.asarray(factor, out_dtype)

    orig_shape = x.shape

    # ---- Lane-dense 2-D layout: (rows, 128); pad the tail only if needed. ----
    rows = -(-total // _LANE)
    padded_total = rows * _LANE
    flat = x.reshape(-1)
    if padded_total != total:
        flat = jnp.pad(flat, (0, padded_total - total))
    x2d = flat.reshape(rows, _LANE)

    # ---- Block rows: big blocks amortize the ~0.35us per-grid-step cost. ----
    in_item = jnp.dtype(x.dtype).itemsize
    out_item = jnp.dtype(out_dtype).itemsize
    rows_budget = max(1, block_bytes // (_LANE * max(in_item, out_item)))
    if rows_budget >= rows:
        tile_rows = rows                   # whole array as a single block
    else:
        # Multiple of 32 keeps sublane packing legal for f32/bf16/int8 alike.
        tile_rows = max(32, (rows_budget // 32) * 32)
    num_blocks = -(-rows // tile_rows)

    kernel = _make_scale_kernel(factor, out_dtype)

    alias = {}
    if donate and out_dtype == x2d.dtype:
        # Opt-in in-place aliasing: under jit with a donated input this avoids a
        # second full-size HBM buffer. Off by default because a non-donated
        # caller buffer forces XLA to insert a protective copy.
        alias = {0: 0}

    out2d = pl.pallas_call(
        kernel,
        out_shape=jax.ShapeDtypeStruct((rows, _LANE), out_dtype),
        grid=(num_blocks,),
        in_specs=[pl.BlockSpec((tile_rows, _LANE), lambda i: (i, 0))],
        out_specs=pl.BlockSpec((tile_rows, _LANE), lambda i: (i, 0)),
        compiler_params=pltpu.CompilerParams(
            dimension_semantics=("parallel",),     # v7x: shard grid over both TCs
            vmem_limit_bytes=32 * 1024 * 1024,
        ),
        cost_estimate=pl.CostEstimate(
            flops=total,
            transcendentals=0,
            bytes_accessed=total * (in_item + out_item),
        ),
        input_output_aliases=alias,
    )(x2d)

    out_flat = out2d.reshape(-1)
    if padded_total != total:
        out_flat = out_flat[:total]
    return out_flat.reshape(orig_shape)


class Scale:
    """JAX/Pallas port of the PyTorch Scale module (factor * x; identity at 1)."""

    def __init__(self, factor):
        self.factor = factor

    def reset_parameters(self):
        pass

    def __call__(self, x):
        return scale(x, self.factor)

    def extra_repr(self):
        return "factor={}".format(self.factor)


if __name__ == "__main__":
    key = jax.random.PRNGKey(0)
    k1, k2, k3 = jax.random.split(key, 3)

    # Case 1: canonical small NCHW activation, forced through the Pallas kernel.
    x1 = jax.random.normal(k1, (2, 4, 16, 16), dtype=jnp.float32)
    f1 = 0.5
    out1 = jax.block_until_ready(scale(x1, f1, use_pallas=True))
    assert out1.shape == x1.shape and out1.dtype == x1.dtype
    assert jnp.allclose(out1, f1 * x1, atol=1e-6, rtol=1e-6)

    # Case 2: larger activation with a small block size to exercise a
    # multi-step pipelined grid (256 rows / 32-row blocks -> grid of 8).
    x2 = jax.random.normal(k2, (4, 8, 32, 32), dtype=jnp.float32)
    f2 = -1.7
    out2 = jax.block_until_ready(scale(x2, f2, block_bytes=16 * 1024, use_pallas=True))
    assert jnp.allclose(out2, f2 * x2, atol=1e-6, rtol=1e-6)

    # Case 3: element count not a multiple of 128 (exercises the lane-pad path).
    x3 = jax.random.normal(k3, (3, 5, 29), dtype=jnp.float32)
    f3 = 2.25
    out3 = jax.block_until_ready(scale(x3, f3, use_pallas=True))
    assert out3.shape == x3.shape
    assert jnp.allclose(out3, f3 * x3, atol=1e-6, rtol=1e-6)

    # Case 4: opt-in in-place aliasing path (reference computed beforehand).
    ref4 = 3.0 * x2
    out4 = jax.block_until_ready(scale(x2, 3.0, use_pallas=True, donate=True))
    assert jnp.allclose(out4, ref4, atol=1e-6, rtol=1e-6)

    # Module wrapper (auto path: x2 is large enough to use Pallas by default)
    # and the factor == 1 identity fast path.
    mod = Scale(0.5)
    out_mod = jax.block_until_ready(mod(x2))
    assert jnp.allclose(out_mod, 0.5 * x2, atol=1e-6, rtol=1e-6)
    out_id = jax.block_until_ready(Scale(1)(x1))
    assert jnp.array_equal(out_id, x1)

    print("KERNEL_OK")
</pallas_src>

<mosaic_0001>
module attributes {stable_mosaic.version = 11 : i64} {
  func.func @kernel(%arg0: i32, %arg1: memref<16x128xf32, #tpu.memory_space<vmem>>, %arg2: memref<16x128xf32, #tpu.memory_space<vmem>>) attributes {dimension_semantics = [#tpu.dimension_semantics<parallel>], iteration_bounds = array<i64: 1>, scalar_prefetch = 0 : i64, scratch_operands = 0 : i64, tpu.core_type = #tpu.core_type<tc>, window_params = [{transform_indices = @transform_0, window_bounds = array<i64: 16, 128>}, {transform_indices = @transform_1, window_bounds = array<i64: 16, 128>}]} {
    %c0 = arith.constant 0 : index
    %c0_0 = arith.constant 0 : index
    %0 = vector.load %arg1[%c0, %c0_0] : memref<16x128xf32, #tpu.memory_space<vmem>>, vector<16x128xf32>
    %cst = arith.constant 5.000000e-01 : f32
    %1 = vector.broadcast %cst : f32 to vector<16x128xf32>
    %2 = arith.mulf %0, %1 : vector<16x128xf32>
    %c0_1 = arith.constant 0 : index
    %c0_2 = arith.constant 0 : index
    %3 = vector.load %arg2[%c0_1, %c0_2] : memref<16x128xf32, #tpu.memory_space<vmem>>, vector<16x128xf32>
    tpu.vector_store %arg2[%c0_1, %c0_2], %2 {strides = array<i32>} : memref<16x128xf32, #tpu.memory_space<vmem>>, vector<16x128xf32>,
    return
  }
  func.func @transform_0(%arg0: i32) -> (i32, i32) {
    %c0_i32 = arith.constant 0 : i32
    %c0_i32_0 = arith.constant 0 : i32
    return %arg0, %c0_i32 : i32, i32
  }
  func.func @transform_1(%arg0: i32) -> (i32, i32) {
    %c0_i32 = arith.constant 0 : i32
    %c0_i32_0 = arith.constant 0 : i32
    return %arg0, %c0_i32 : i32, i32
  }
}

</mosaic_0001>

<bundles_post_ra>
// kernel: tpu_custom_call.1
= control target key start
LH: loop header
LB: loop body
LE: loop exit
PB: predicated region body
PF: predicated region fallthrough
CT: control target
= control target key end

     0   :  { %6 = vsyncpa [#allocation3], 0  ;;  %s136_s0 = inlined_call_operand.hbm [shape: f32[16,128], index: 0, kind: input, shape index: {}]   ;;  %s137_s1 = inlined_call_operand.hbm [shape: f32[16,128], index: 1, kind: output, shape index: {}]  }
   0x1   :  { %7 = vsyncpa [#allocation4], 0  ;;  %s98_s6 = smov [#allocation2]   ;;  %s50_s10 = scalar_lea.hbm %s136_s0, 256 }
   0x2   :  { %s13_s7 = sshll.u32 %s98_s6, 4  ;;  %p51_p0 = scmp.ne.s32.totalorder %s136_s0, %s50_s10  ;;  %s14_s7 = int_to_ptr.vmem [resolvable:$true] %s13_s7 }
   0x3   :  { %p54_p1 = scmp.lt.u32.totalorder %s50_s10, %s136_s0 }
   0x5   :  { %p56_p2 = pnand %p54_p1, %p51_p0 }
   0x7   :  { %59 = shalt.err (!%p56_p2)
}
   0x8   :  { %s60_s15 = scalar_lea.vmem %s14_s7, 256  ;;  %p65_p4 = scmp.lt.s32.totalorder %s14_s7, %s14_s7 }
   0x9   :  { %p61_p3 = scmp.ne.s32.totalorder %s14_s7, %s60_s15  ;;  %p66_p5 = scmp.lt.s32.totalorder %s60_s15, %s60_s15 }
   0xb   :  { %p67_p6 = por %p66_p5, %p65_p4 }
   0xd   :  { %p68_p7 = pnand %p67_p6, %p61_p3 }
   0xf   :  { %71 = shalt.err (!%p68_p7)
}
  0x10   :  { %s99_s16 = smov 128   ;;  %s100_s17 = smov 8  }
  0x11   :  { %19 = dma.hbm_to_vmem [thread:$0]  %s136_s0, 256, %s14_s7, [#allocation3], %s99_s16, %s99_s16, %s100_s17  }
  0x12   :  { %94 = dma.done.wait [#allocation3], 256  }
  0x13   :  { %95 = vsyncadd [#allocation3], 4294967040  ;;  %s101_s20 = smov [#allocation5]   ;;  %v23_v0 = vld [vmem:[#allocation2] sm:$0xff]  ;;  %v24_v1 = vld [vmem:[#allocation2 + $0x8] sm:$0xff] }
  0x14   :  { %s34_s21 = sshll.u32 %s101_s20, 4  ;;  %v25_v2 = vmul.f32 0.5, %v23_v0  ;;  %v26_v3 = vmul.f32 0.5, %v24_v1  ;;  %s35_s21 = int_to_ptr.vmem [resolvable:$true] %s34_s21 }
  0x15   :  { %s72_s22 = scalar_lea.vmem %s35_s21, 256  ;;  %p77_p9 = scmp.lt.s32.totalorder %s35_s21, %s35_s21 }
  0x16   :  { %27 = vst [vmem:[#allocation5] sm:$0xff] %v25_v2  ;;  %28 = vst [vmem:[#allocation5 + $0x8] sm:$0xff] %v26_v3  ;;  %p73_p8 = scmp.ne.s32.totalorder %s35_s21, %s72_s22  ;;  %p78_p10 = scmp.lt.s32.totalorder %s72_s22, %s72_s22 }
  0x18   :  { %p79_p11 = por %p78_p10, %p77_p9 }
  0x1a   :  { %p80_p12 = pnand %p79_p11, %p73_p8 }
  0x1c   :  { %83 = shalt.err (!%p80_p12)
}
  0x1d   :  { %s84_s24 = scalar_lea.hbm %s137_s1, 256 }
  0x1e   :  { %p85_p13 = scmp.ne.s32.totalorder %s137_s1, %s84_s24  ;;  %p88_p0 = scmp.lt.u32.totalorder %s84_s24, %s137_s1 }
  0x20   :  { %p90_p1 = pnand %p88_p0, %p85_p13 }
  0x22   :  { %93 = shalt.err (!%p90_p1)
}
  0x23   :  { %40 = dma.vmem_to_hbm [thread:$0]  %s35_s21, 256, %s137_s1, [#allocation4], %s99_s16, %s99_s16, %s100_s17  }
  0x24   :  { %96 = dma.done.wait [#allocation4], 256  }
  0x25   :  { %97 = vsyncadd [#allocation4], 4294967040 }
  0x26   :  { %44 = vsyncpa [#allocation3], 1 }
  0x27   :  { %45 = vsyncpa [#allocation4], 1 }

</bundles_post_ra>
